<compile_context>
chip_gen: v5e
topology: v5e:2x2
jax: 0.10.0
libtpu: 0.0.40
codegen_flags: <defaults>
</compile_context>

<pallas_src>
import numpy as np
import jax
import jax.numpy as jnp
from jax.experimental import pallas as pl
from jax.experimental.pallas import tpu as pltpu

NEG = -1.0e30  # additive mask value for invalid time positions


def _round_up(n, m):
    return ((n + m - 1) // m) * m


def make_fused_kernel(B_tile, T, K_max, C, H_pad):
    """Fused in-kernel im2col + conv(all branches) + mask + max + bias + relu."""

    def kernel(x_ref, w_ref, b_ref, m_ref, o_ref):
        # x_ref: (B_tile, L_pad, C) bf16   w_ref: (K_max*C, H_pad) bf16
        # b_ref: (1, H_pad) f32            m_ref: (T, H_pad) f32
        # o_ref: (B_tile, H_pad) f32
        #
        # Upcast the (tiny) activation tile once so the per-tap sublane-offset
        # slices operate on a plain 32-bit layout; matmul operands are cast
        # back to bf16 so the MXU runs at its native rate with f32 accumulate.
        xv = x_ref[...].astype(jnp.float32)              # (B_tile, L_pad, C)

        acc = jnp.zeros((B_tile * T, H_pad), jnp.float32)
        for j in range(K_max):                           # static unroll (K_max small)
            xs = xv[:, j:j + T, :].reshape(B_tile * T, C).astype(jnp.bfloat16)
            acc = acc + jnp.dot(xs, w_ref[j * C:(j + 1) * C, :],
                                preferred_element_type=jnp.float32)

        # Tile-aligned split (T multiple of 8); kill t >= L_out rows per branch.
        s = acc.reshape(B_tile, T, H_pad) + m_ref[...]   # (B_tile, T, H_pad)
        pooled = jnp.max(s, axis=1)                      # (B_tile, H_pad)
        # bias + relu AFTER the max (equivalent); single lane-dense full store.
        o_ref[...] = jnp.maximum(pooled + b_ref[...], 0.0)

    return kernel


def pack_params(branch_params, L):
    """Stack per-branch Conv1d weights/bias into one lane-dense slab.

    branch_params: list of (K, w (K, C, H), b (1, H)).
    Returns (W bf16 (K_max*C, H_pad), bias f32 (1, H_pad), mask f32 (T, H_pad),
             K_max, T, H_pad, H_total).
    """
    Ks = [K for (K, _, _) in branch_params]
    K_max = max(Ks)
    C = branch_params[0][1].shape[1]
    H = branch_params[0][1].shape[2]
    n_br = len(branch_params)
    H_total = n_br * H
    H_pad = _round_up(H_total, 128)        # lane-dense output / MXU N width
    T = _round_up(L - min(Ks) + 1, 8)      # time tile, sublane aligned

    W = np.zeros((K_max * C, H_pad), np.float32)
    bias = np.zeros((1, H_pad), np.float32)
    mask = np.zeros((T, H_pad), np.float32)
    for i, (K, w, b) in enumerate(branch_params):
        wn = np.asarray(w, np.float32)            # (K, C, H)
        for j in range(K):                        # taps K..K_max-1 stay zero
            W[j * C:(j + 1) * C, i * H:(i + 1) * H] = wn[j]
        bias[0, i * H:(i + 1) * H] = np.asarray(b, np.float32).reshape(-1)
        L_out = L - K + 1
        mask[L_out:, i * H:(i + 1) * H] = NEG     # kill t >= L_out before max
    return (jnp.asarray(W, jnp.bfloat16), jnp.asarray(bias), jnp.asarray(mask),
            K_max, T, H_pad, H_total)


def textcnn_forward(x, branch_params, *, b_tile=None):
    """x: (B, L, C) float32 -> (B, H * n_branches). Eval-mode TextCNN."""
    B, L, C = x.shape
    W, bias, mask, K_max, T, H_pad, H_total = pack_params(branch_params, L)

    # Batch tile: multiple of 8 (unmasked full-vreg (B_tile, 128) stores),
    # capped so the double-buffered x block + the (B_tile*T, 128) f32
    # accumulator stay far inside the scoped-VMEM defaults
    # (16 MiB v5e / 32 MiB v6e, v7x).
    if b_tile is None:
        b_tile = min(_round_up(B, 8), 64)
    B_tile = _round_up(b_tile, 8)
    B_pad = _round_up(max(B, B_tile), B_tile)

    # Zero-pad time (window slack for the in-kernel unfold) and batch (grid
    # alignment).  Padded time rows are masked; padded batch rows are sliced.
    L_pad = _round_up(T + K_max - 1, 8)
    x_pad = jnp.pad(x, ((0, B_pad - B), (0, L_pad - L), (0, 0)))
    x_bf16 = x_pad.astype(jnp.bfloat16)   # bf16 HBM stream / MXU operands

    grid = (B_pad // B_tile,)
    cost = pl.CostEstimate(
        flops=2 * B_pad * T * (K_max * C) * H_pad,
        transcendentals=0,
        bytes_accessed=int(x_bf16.size) * 2 + int(W.size) * 2
                       + int(bias.size) * 4 + int(mask.size) * 4
                       + B_pad * H_pad * 4,
    )

    out = pl.pallas_call(
        make_fused_kernel(B_tile, T, K_max, C, H_pad),
        out_shape=jax.ShapeDtypeStruct((B_pad, H_pad), jnp.float32),
        grid=grid,
        in_specs=[
            # Activations: only operand tiled over the batch grid axis
            # (double-buffered by the BlockSpec pipeline).
            pl.BlockSpec((B_tile, L_pad, C), lambda i: (i, 0, 0)),
            # Weights / bias / mask: constant block index -> VMEM-resident
            # across grid steps (no per-step re-DMA).
            pl.BlockSpec((K_max * C, H_pad), lambda i: (0, 0)),
            pl.BlockSpec((1, H_pad), lambda i: (0, 0)),
            pl.BlockSpec((T, H_pad), lambda i: (0, 0)),
        ],
        out_specs=pl.BlockSpec((B_tile, H_pad), lambda i: (i, 0)),
        compiler_params=pltpu.CompilerParams(
            dimension_semantics=("parallel",)),   # batch tiles independent (v7x 2 TCs)
        cost_estimate=cost,
    )(x_bf16, W, bias, mask)

    # TODO(synk): nn.Dropout is identity at inference; training-mode dropout
    # (random masking + 1/(1-p) scaling) is not implemented here.
    # TODO(synk): downstream consumers could read the padded (B_pad, 128) slab
    # directly (padding columns are exactly zero) and skip this slice copy.
    return out[:B, :H_total]


def init_params(key, input_size, hidden_size, kernel_sizes):
    """Deterministic Conv1d-style init; weights stored as (K, C, H)."""
    params = []
    for i, K in enumerate(kernel_sizes):
        kw, kb = jax.random.split(jax.random.fold_in(key, i))
        bound = 1.0 / (input_size * K) ** 0.5
        w = jax.random.uniform(kw, (K, input_size, hidden_size),
                               jnp.float32, -bound, bound)
        b = jax.random.uniform(kb, (1, hidden_size),
                               jnp.float32, -bound, bound)
        params.append((K, w, b))
    return params


def reference_forward(x, branch_params):
    """Pure-JAX f32 reference mirroring the PyTorch forward (eval mode)."""
    B, L, C = x.shape
    pooled = []
    for (K, w, b) in branch_params:
        L_out = L - K + 1
        acc = jnp.zeros((B, L_out, w.shape[2]), jnp.float32)
        for j in range(K):
            acc = acc + jnp.einsum('blc,ch->blh', x[:, j:j + L_out, :], w[j])
        acc = jnp.maximum(acc + b[None], 0.0)
        pooled.append(jnp.max(acc, axis=1))
    return jnp.concatenate(pooled, axis=1)


if __name__ == "__main__":
    # Small shapes consistent with the module's forward:
    B, L, input_size, hidden_size = 2, 16, 8, 32
    kernel_sizes = [2, 3, 4]

    key = jax.random.PRNGKey(0)
    kx, kp = jax.random.split(key)
    x = jax.random.normal(kx, (B, L, input_size), jnp.float32)
    params = init_params(kp, input_size, hidden_size, kernel_sizes)

    out = jax.block_until_ready(textcnn_forward(x, params))

    ref = reference_forward(x, params)
    assert out.shape == (B, hidden_size * len(kernel_sizes))
    # bf16 MXU operands vs pure-f32 reference: tolerance loosened accordingly.
    err = float(jnp.max(jnp.abs(out - ref)))
    assert jnp.allclose(out, ref, atol=2e-2, rtol=2e-2), err

    print("KERNEL_OK")
</pallas_src>

<mosaic_0001>
module attributes {stable_mosaic.version = 11 : i64} {
  func.func @kernel(%arg0: i32, %arg1: memref<8x24x8xbf16, #tpu.memory_space<vmem>>, %arg2: memref<32x128xbf16, #tpu.memory_space<vmem>>, %arg3: memref<1x128xf32, #tpu.memory_space<vmem>>, %arg4: memref<16x128xf32, #tpu.memory_space<vmem>>, %arg5: memref<8x128xf32, #tpu.memory_space<vmem>>) attributes {dimension_semantics = [#tpu.dimension_semantics<parallel>], iteration_bounds = array<i64: 1>, scalar_prefetch = 0 : i64, scratch_operands = 0 : i64, tpu.core_type = #tpu.core_type<tc>, window_params = [{transform_indices = @transform_0, window_bounds = array<i64: 8, 24, 8>}, {pipeline_mode = #tpu.pipeline_mode<synchronous>, transform_indices = @transform_1, window_bounds = array<i64: 32, 128>}, {pipeline_mode = #tpu.pipeline_mode<synchronous>, transform_indices = @transform_2, window_bounds = array<i64: 1, 128>}, {pipeline_mode = #tpu.pipeline_mode<synchronous>, transform_indices = @transform_3, window_bounds = array<i64: 16, 128>}, {transform_indices = @transform_4, window_bounds = array<i64: 8, 128>}]} {
    %c0 = arith.constant 0 : index
    %c0_0 = arith.constant 0 : index
    %c0_1 = arith.constant 0 : index
    %0 = vector.load %arg1[%c0, %c0_0, %c0_1] : memref<8x24x8xbf16, #tpu.memory_space<vmem>>, vector<8x24x8xbf16>
    %1 = arith.extf %0 : vector<8x24x8xbf16> to vector<8x24x8xf32>
    %cst = arith.constant 0.000000e+00 : f32
    %2 = vector.broadcast %cst : f32 to vector<128x128xf32>
    %3 = vector.extract_strided_slice %1 {offsets = [0, 0, 0], sizes = [8, 16, 8], strides = [1, 1, 1]} : vector<8x24x8xf32> to vector<8x16x8xf32>
    %4 = vector.shape_cast %3 : vector<8x16x8xf32> to vector<128x8xf32>
    %5 = arith.truncf %4 : vector<128x8xf32> to vector<128x8xbf16>
    %c0_2 = arith.constant 0 : index
    %c0_3 = arith.constant 0 : index
    %6 = vector.load %arg2[%c0_2, %c0_3] : memref<32x128xbf16, #tpu.memory_space<vmem>>, vector<8x128xbf16>
    %cst_4 = arith.constant dense<0.000000e+00> : vector<128x128xf32>
    %7 = tpu.matmul %5, %6, %cst_4 {dimension_numbers = #tpu.dot_dimension_numbers<[1], [0], [0], [1], [0, 0, 1, 1], [], []>} : vector<128x8xbf16>, vector<8x128xbf16>, vector<128x128xf32> -> vector<128x128xf32>
    %8 = arith.addf %2, %7 : vector<128x128xf32>
    %9 = vector.extract_strided_slice %1 {offsets = [0, 1, 0], sizes = [8, 16, 8], strides = [1, 1, 1]} : vector<8x24x8xf32> to vector<8x16x8xf32>
    %10 = vector.shape_cast %9 : vector<8x16x8xf32> to vector<128x8xf32>
    %11 = arith.truncf %10 : vector<128x8xf32> to vector<128x8xbf16>
    %c8 = arith.constant 8 : index
    %c0_5 = arith.constant 0 : index
    %12 = vector.load %arg2[%c8, %c0_5] : memref<32x128xbf16, #tpu.memory_space<vmem>>, vector<8x128xbf16>
    %cst_6 = arith.constant dense<0.000000e+00> : vector<128x128xf32>
    %13 = tpu.matmul %11, %12, %cst_6 {dimension_numbers = #tpu.dot_dimension_numbers<[1], [0], [0], [1], [0, 0, 1, 1], [], []>} : vector<128x8xbf16>, vector<8x128xbf16>, vector<128x128xf32> -> vector<128x128xf32>
    %14 = arith.addf %8, %13 : vector<128x128xf32>
    %15 = vector.extract_strided_slice %1 {offsets = [0, 2, 0], sizes = [8, 16, 8], strides = [1, 1, 1]} : vector<8x24x8xf32> to vector<8x16x8xf32>
    %16 = vector.shape_cast %15 : vector<8x16x8xf32> to vector<128x8xf32>
    %17 = arith.truncf %16 : vector<128x8xf32> to vector<128x8xbf16>
    %c16 = arith.constant 16 : index
    %c0_7 = arith.constant 0 : index
    %18 = vector.load %arg2[%c16, %c0_7] : memref<32x128xbf16, #tpu.memory_space<vmem>>, vector<8x128xbf16>
    %cst_8 = arith.constant dense<0.000000e+00> : vector<128x128xf32>
    %19 = tpu.matmul %17, %18, %cst_8 {dimension_numbers = #tpu.dot_dimension_numbers<[1], [0], [0], [1], [0, 0, 1, 1], [], []>} : vector<128x8xbf16>, vector<8x128xbf16>, vector<128x128xf32> -> vector<128x128xf32>
    %20 = arith.addf %14, %19 : vector<128x128xf32>
    %21 = vector.extract_strided_slice %1 {offsets = [0, 3, 0], sizes = [8, 16, 8], strides = [1, 1, 1]} : vector<8x24x8xf32> to vector<8x16x8xf32>
    %22 = vector.shape_cast %21 : vector<8x16x8xf32> to vector<128x8xf32>
    %23 = arith.truncf %22 : vector<128x8xf32> to vector<128x8xbf16>
    %c24 = arith.constant 24 : index
    %c0_9 = arith.constant 0 : index
    %24 = vector.load %arg2[%c24, %c0_9] : memref<32x128xbf16, #tpu.memory_space<vmem>>, vector<8x128xbf16>
    %cst_10 = arith.constant dense<0.000000e+00> : vector<128x128xf32>
    %25 = tpu.matmul %23, %24, %cst_10 {dimension_numbers = #tpu.dot_dimension_numbers<[1], [0], [0], [1], [0, 0, 1, 1], [], []>} : vector<128x8xbf16>, vector<8x128xbf16>, vector<128x128xf32> -> vector<128x128xf32>
    %26 = arith.addf %20, %25 : vector<128x128xf32>
    %27 = vector.shape_cast %26 : vector<128x128xf32> to vector<8x16x128xf32>
    %c0_11 = arith.constant 0 : index
    %c0_12 = arith.constant 0 : index
    %28 = vector.load %arg4[%c0_11, %c0_12] : memref<16x128xf32, #tpu.memory_space<vmem>>, vector<16x128xf32>
    %29 = vector.shape_cast %28 : vector<16x128xf32> to vector<1x16x128xf32>
    %30 = vector.broadcast %29 : vector<1x16x128xf32> to vector<8x16x128xf32>
    %31 = arith.addf %27, %30 : vector<8x16x128xf32>
    %cst_13 = arith.constant dense<0xFF800000> : vector<8x128xf32>
    %32 = vector.multi_reduction <maximumf>, %31, %cst_13 [1] : vector<8x16x128xf32> to vector<8x128xf32>
    %c0_14 = arith.constant 0 : index
    %c0_15 = arith.constant 0 : index
    %33 = vector.load %arg3[%c0_14, %c0_15] : memref<1x128xf32, #tpu.memory_space<vmem>>, vector<1x128xf32>
    %34 = vector.broadcast %33 : vector<1x128xf32> to vector<8x128xf32>
    %35 = arith.addf %32, %34 : vector<8x128xf32>
    %cst_16 = arith.constant 0.000000e+00 : f32
    %36 = vector.broadcast %cst_16 : f32 to vector<8x128xf32>
    %37 = arith.maximumf %35, %36 : vector<8x128xf32>
    %c0_17 = arith.constant 0 : index
    %c0_18 = arith.constant 0 : index
    %38 = vector.load %arg5[%c0_17, %c0_18] : memref<8x128xf32, #tpu.memory_space<vmem>>, vector<8x128xf32>
    tpu.vector_store %arg5[%c0_17, %c0_18], %37 {strides = array<i32>} : memref<8x128xf32, #tpu.memory_space<vmem>>, vector<8x128xf32>,
    return
  }
  func.func @transform_0(%arg0: i32) -> (i32, i32, i32) {
    %c0_i32 = arith.constant 0 : i32
    %c0_i32_0 = arith.constant 0 : i32
    %c0_i32_1 = arith.constant 0 : i32
    return %arg0, %c0_i32, %c0_i32_0 : i32, i32, i32
  }
  func.func @transform_1(%arg0: i32) -> (i32, i32) {
    %c0_i32 = arith.constant 0 : i32
    %c0_i32_0 = arith.constant 0 : i32
    %c0_i32_1 = arith.constant 0 : i32
    return %c0_i32, %c0_i32_0 : i32, i32
  }
  func.func @transform_2(%arg0: i32) -> (i32, i32) {
    %c0_i32 = arith.constant 0 : i32
    %c0_i32_0 = arith.constant 0 : i32
    %c0_i32_1 = arith.constant 0 : i32
    return %c0_i32, %c0_i32_0 : i32, i32
  }
  func.func @transform_3(%arg0: i32) -> (i32, i32) {
    %c0_i32 = arith.constant 0 : i32
    %c0_i32_0 = arith.constant 0 : i32
    %c0_i32_1 = arith.constant 0 : i32
    return %c0_i32, %c0_i32_0 : i32, i32
  }
  func.func @transform_4(%arg0: i32) -> (i32, i32) {
    %c0_i32 = arith.constant 0 : i32
    %c0_i32_0 = arith.constant 0 : i32
    return %arg0, %c0_i32 : i32, i32
  }
}

</mosaic_0001>

<bundles_post_ra>
// kernel: tpu_custom_call.1
= control target key start
LH: loop header
LB: loop body
LE: loop exit
PB: predicated region body
PF: predicated region fallthrough
CT: control target
= control target key end

     0   :  { %vm191_vm0 = vcmask 1043456   ;;  %vm166_vm1 = vcmask 64512   ;;  %vm100_vm2 = vcmask 1046528   ;;  %vm320_vm3 = vcmask 1045504   ;;  %s1095_s0 = inlined_call_operand.vmem [shape: bf16[8,24,8], index: 0, kind: input, shape index: {}]   ;;  %s1096_s1 = inlined_call_operand.vmem [shape: bf16[32,128], index: 1, kind: input, shape index: {}]   ;;  %s1097_s2 = inlined_call_operand.vmem [shape: f32[1,128], index: 2, kind: input, shape index: {}]   ;;  %s1098_s3 = inlined_call_operand.vmem [shape: f32[16,128], index: 3, kind: input, shape index: {}]   ;;  %s1099_s4 = inlined_call_operand.hbm [shape: f32[8,128], index: 4, kind: output, shape index: {}]  }
   0x1   :  { %v75_v0 = vld [vmem:[%s1096_s1] sm:$0xf]  ;;  %v165_v1 = vld [vmem:[%s1096_s1 + $0x4] sm:$0xf]  ;;  %v385_v7 = vld [vmem:[%s1096_s1 + $0x8] sm:$0xf] }
   0x2   :  { %v810_v2 = vld [vmem:[%s1095_s0] sm:$0xff]   ;;  %v269_v3 = vsel %vm191_vm0, %v75_v0, 0  ;;  %v193_v4 = vsel %vm191_vm0, %v165_v1, 0  ;;  %v543_v8 = vld [vmem:[%s1096_s1 + $0xc] sm:$0xf]  ;;  %v411_v9 = vsel %vm191_vm0, %v385_v7, 0 }
   0x3   :  { %v811_v5 = vunpack.c.l.bf16 %v810_v2  ;;  %v812_v6 = vunpack.c.h.bf16 %v810_v2  ;;  %278 = vmatpush.bf16.msra.mxu1 %v269_v3  ;;  %202 = vmatpush.bf16.msra.mxu0 %v193_v4  ;;  %v569_v10 = vsel %vm191_vm0, %v543_v8, 0  ;;  %v857_v11 = vld [vmem:[%s1095_s0 + $0x8] sm:$0xff]   ;;  %vm478_vm4 = vcmask 1044480  }
   0x4   :  { %420 = vmatpush.bf16.msra.mxu2 %v411_v9  ;;  %578 = vmatpush.bf16.msra.mxu3 %v569_v10  ;;  %v815_v18 = vunpack.c.l.bf16 %v857_v11 }
   0x5   :  { %v101_v12 = vrot.slane %v811_v5, 1  ;;  %v102_v13 = vrot.slane %v812_v6, 1  ;;  %v321_v14 = vrot.slane %v811_v5, 2  ;;  %v322_v15 = vrot.slane %v812_v6, 2 }
   0x6   :  { %v479_v16 = vrot.slane %v811_v5, 3  ;;  %v480_v17 = vrot.slane %v812_v6, 3  ;;  %785 = vmatmul.msk.bf16.vlgmr.msra.gmra.mxu1 %vm166_vm1, %v810_v2 }
   0x7   :  { %v103_v19 = vsel %vm100_vm2, %v101_v12, %v102_v13  ;;  %v323_v20 = vsel %vm320_vm3, %v321_v14, %v322_v15 }
   0x8   :  { %9 = vsyncpa [#allocation3], 0  ;;  %v104_v21 = vrot.slane %v815_v18, 1  ;;  %v324_v22 = vrot.slane %v815_v18, 2  ;;  %v481_v23 = vsel %vm478_vm4, %v479_v16, %v480_v17  ;;  %v482_v24 = vrot.slane %v815_v18, 3  ;;  %v858_v31 = vld [vmem:[%s1095_s0 + $0x10] sm:$0xff]  }
   0x9   :  { %v816_v32 = vunpack.c.h.bf16 %v857_v11  ;;  %v819_v33 = vunpack.c.l.bf16 %v858_v31  ;;  %v820_v34 = vunpack.c.h.bf16 %v858_v31  ;;  %v859_v54 = vld [vmem:[%s1095_s0 + $0x18] sm:$0xff]   ;;  %v860_v55 = vld [vmem:[%s1095_s0 + $0x20] sm:$0xff]   ;;  %vm739_vm5 = vcmask 1041409   ;;  %s768_s1 = sshll.u32 %s1099_s4, 4  ;;  %s769_s1 = int_to_ptr.hbm [resolvable:$true] %s768_s1 }
   0xa   :  { %v105_v25 = vsel %vm100_vm2, %v102_v13, %v104_v21  ;;  %v325_v26 = vsel %vm320_vm3, %v322_v15, %v324_v22  ;;  %v483_v27 = vsel %vm478_vm4, %v480_v17, %v482_v24  ;;  %v823_v56 = vunpack.c.l.bf16 %v859_v54  ;;  %v861_v13 = vld [vmem:[%s1095_s0 + $0x28] sm:$0xff]  }
   0xb   :  { %v157_v28 = vpack.c.bf16 %v105_v25, %v103_v19  ;;  %v377_v29 = vpack.c.bf16 %v325_v26, %v323_v20  ;;  %v535_v30 = vpack.c.bf16 %v483_v27, %v481_v23  ;;  %v106_v35 = vrot.slane %v816_v32, 1 }
   0xc   :  { %v326_v36 = vrot.slane %v816_v32, 2  ;;  %v107_v37 = vrot.slane %v819_v33, 1  ;;  %v109_v38 = vrot.slane %v820_v34, 1  ;;  %v327_v39 = vrot.slane %v819_v33, 2 }
   0xd   :  { %777 = vmatmul.msk.bf16.vlgmr.msra.gmra.mxu0 %vm166_vm1, %v157_v28  ;;  %793 = vmatmul.msk.bf16.vlgmr.msra.gmra.mxu2 %vm166_vm1, %v377_v29  ;;  %v329_v40 = vrot.slane %v820_v34, 2  ;;  %v68_v41 = vpack.c.bf16 %v819_v33, %v816_v32  ;;  %v484_v42 = vrot.slane %v816_v32, 3  ;;  %v485_v43 = vrot.slane %v819_v33, 3 }
   0xe   :  { %801 = vmatmul.msk.bf16.vlgmr.msra.gmra.mxu3 %vm166_vm1, %v535_v30  ;;  %v487_v44 = vrot.slane %v820_v34, 3  ;;  %v108_v45 = vsel %vm100_vm2, %v106_v35, %v107_v37  ;;  %v110_v46 = vsel %vm100_vm2, %v107_v37, %v109_v38  ;;  %v328_v47 = vsel %vm320_vm3, %v326_v36, %v327_v39  ;;  %v862_v36 = vld [vmem:[%s1095_s0 + $0x30] sm:$0xff]   ;;  %v863_v37 = vld [vmem:[%s1095_s0 + $0x38] sm:$0xff]  }
   0xf   :  { %v330_v48 = vsel %vm320_vm3, %v327_v39, %v329_v40  ;;  %v486_v49 = vsel %vm478_vm4, %v484_v42, %v485_v43  ;;  %v158_v51 = vpack.c.bf16 %v110_v46, %v108_v45  ;;  %v824_v57 = vunpack.c.h.bf16 %v859_v54 }
  0x10   :  { %v488_v50 = vsel %vm478_vm4, %v485_v43, %v487_v44  ;;  %v378_v52 = vpack.c.bf16 %v330_v48, %v328_v47  ;;  %v827_v58 = vunpack.c.l.bf16 %v860_v55  ;;  %v111_v59 = vrot.slane %v823_v56, 1 }
  0x11   :  { %v536_v53 = vpack.c.bf16 %v488_v50, %v486_v49  ;;  %v112_v60 = vrot.slane %v824_v57, 1  ;;  %v331_v61 = vrot.slane %v823_v56, 2  ;;  %v332_v62 = vrot.slane %v824_v57, 2 }
  0x12   :  { %v114_v63 = vrot.slane %v827_v58, 1  ;;  %v334_v0 = vrot.slane %v827_v58, 2  ;;  %v489_v1 = vrot.slane %v823_v56, 3  ;;  %v490_v2 = vrot.slane %v824_v57, 3 }
  0x13   :  { %v492_v3 = vrot.slane %v827_v58, 3  ;;  %v113_v4 = vsel %vm100_vm2, %v111_v59, %v112_v60  ;;  %v333_v6 = vsel %vm320_vm3, %v331_v61, %v332_v62  ;;  %v828_v14 = vunpack.c.h.bf16 %v860_v55  ;;  %v864_v59 = vld [vmem:[%s1095_s0 + $0x40] sm:$0xff]  }
  0x14   :  { %v115_v5 = vsel %vm100_vm2, %v112_v60, %v114_v63  ;;  %v335_v7 = vsel %vm320_vm3, %v332_v62, %v334_v0  ;;  %v491_v8 = vsel %vm478_vm4, %v489_v1, %v490_v2  ;;  %v831_v15 = vunpack.c.l.bf16 %v861_v13 }
  0x15   :  { %v493_v9 = vsel %vm478_vm4, %v490_v2, %v492_v3  ;;  %v159_v10 = vpack.c.bf16 %v115_v5, %v113_v4  ;;  %v379_v11 = vpack.c.bf16 %v335_v7, %v333_v6  ;;  %v832_v16 = vunpack.c.h.bf16 %v861_v13 }
  0x16   :  { %786 = vmatmul.msk.bf16.gmra.mxu1 %vm166_vm1, %v68_v41  ;;  %v537_v12 = vpack.c.bf16 %v493_v9, %v491_v8  ;;  %v116_v17 = vrot.slane %v828_v14, 1  ;;  %v117_v18 = vrot.slane %v831_v15, 1  ;;  %v336_v20 = vrot.slane %v828_v14, 2 }
  0x17   :  { %v119_v19 = vrot.slane %v832_v16, 1  ;;  %v337_v21 = vrot.slane %v831_v15, 2  ;;  %v339_v22 = vrot.slane %v832_v16, 2  ;;  %v70_v23 = vpack.c.bf16 %v831_v15, %v828_v14 }
  0x18   :  { %v494_v24 = vrot.slane %v828_v14, 3  ;;  %v495_v25 = vrot.slane %v831_v15, 3  ;;  %v497_v26 = vrot.slane %v832_v16, 3  ;;  %v118_v27 = vsel %vm100_vm2, %v116_v17, %v117_v18 }
  0x19   :  { %v120_v28 = vsel %vm100_vm2, %v117_v18, %v119_v19  ;;  %v338_v29 = vsel %vm320_vm3, %v336_v20, %v337_v21  ;;  %v340_v30 = vsel %vm320_vm3, %v337_v21, %v339_v22  ;;  %v835_v38 = vunpack.c.l.bf16 %v862_v36  ;;  %v865_v18 = vld [vmem:[%s1095_s0 + $0x48] sm:$0xff]   ;;  %v866_v19 = vld [vmem:[%s1095_s0 + $0x50] sm:$0xff]  }
  0x1a   :  { %v496_v31 = vsel %vm478_vm4, %v494_v24, %v495_v25  ;;  %v498_v32 = vsel %vm478_vm4, %v495_v25, %v497_v26  ;;  %v160_v33 = vpack.c.bf16 %v120_v28, %v118_v27  ;;  %v380_v34 = vpack.c.bf16 %v340_v30, %v338_v29 }
  0x1b   :  { %v538_v35 = vpack.c.bf16 %v498_v32, %v496_v31  ;;  %v836_v39 = vunpack.c.h.bf16 %v862_v36  ;;  %v839_v40 = vunpack.c.l.bf16 %v863_v37  ;;  %v121_v41 = vrot.slane %v835_v38, 1 }
  0x1c   :  { %v341_v43 = vrot.slane %v835_v38, 2  ;;  %v499_v47 = vrot.slane %v835_v38, 3  ;;  %v840_v60 = vunpack.c.h.bf16 %v863_v37  ;;  %v843_v61 = vunpack.c.l.bf16 %v864_v59 }
  0x1d   :  { %778 = vmatmul.msk.bf16.gmra.mxu0 %vm166_vm1, %v158_v51  ;;  %794 = vmatmul.msk.bf16.gmra.mxu2 %vm166_vm1, %v378_v52  ;;  %v122_v42 = vrot.slane %v836_v39, 1  ;;  %v342_v44 = vrot.slane %v836_v39, 2  ;;  %v124_v45 = vrot.slane %v839_v40, 1  ;;  %v344_v46 = vrot.slane %v839_v40, 2 }
  0x1e   :  { %802 = vmatmul.msk.bf16.gmra.mxu3 %vm166_vm1, %v536_v53  ;;  %v500_v48 = vrot.slane %v836_v39, 3  ;;  %v502_v49 = vrot.slane %v839_v40, 3  ;;  %v844_v62 = vunpack.c.h.bf16 %v864_v59  ;;  %v126_v63 = vrot.slane %v840_v60, 1 }
  0x1f   :  { %v123_v50 = vsel %vm100_vm2, %v121_v41, %v122_v42  ;;  %v125_v51 = vsel %vm100_vm2, %v122_v42, %v124_v45  ;;  %v343_v52 = vsel %vm320_vm3, %v341_v43, %v342_v44  ;;  %v345_v53 = vsel %vm320_vm3, %v342_v44, %v344_v46  ;;  %v867_v41 = vld [vmem:[%s1095_s0 + $0x58] sm:$0xff]  }
  0x20   :  { %v503_v55 = vsel %vm478_vm4, %v500_v48, %v502_v49  ;;  %v161_v56 = vpack.c.bf16 %v125_v51, %v123_v50  ;;  %v381_v57 = vpack.c.bf16 %v345_v53, %v343_v52  ;;  %v127_v0 = vrot.slane %v843_v61, 1 }
  0x21   :  { %v129_v1 = vrot.slane %v844_v62, 1  ;;  %v346_v2 = vrot.slane %v840_v60, 2  ;;  %v347_v3 = vrot.slane %v843_v61, 2  ;;  %v349_v4 = vrot.slane %v844_v62, 2 }
  0x22   :  { %v72_v5 = vpack.c.bf16 %v843_v61, %v840_v60  ;;  %v504_v6 = vrot.slane %v840_v60, 3  ;;  %v505_v7 = vrot.slane %v843_v61, 3  ;;  %v507_v8 = vrot.slane %v844_v62, 3 }
  0x23   :  { %v128_v9 = vsel %vm100_vm2, %v126_v63, %v127_v0  ;;  %v847_v20 = vunpack.c.l.bf16 %v865_v18  ;;  %v848_v21 = vunpack.c.h.bf16 %v865_v18  ;;  %v851_v22 = vunpack.c.l.bf16 %v866_v19 }
  0x24   :  { %v506_v13 = vsel %vm478_vm4, %v504_v6, %v505_v7  ;;  %v508_v14 = vsel %vm478_vm4, %v505_v7, %v507_v8  ;;  %v852_v42 = vunpack.c.h.bf16 %v866_v19  ;;  %v855_v43 = vunpack.c.l.bf16 %v867_v41 }
  0x25   :  { %v540_v17 = vpack.c.bf16 %v508_v14, %v506_v13  ;;  %v132_v24 = vrot.slane %v848_v21, 1  ;;  %v351_v25 = vrot.slane %v847_v20, 2  ;;  %v352_v26 = vrot.slane %v848_v21, 2  ;;  %v1053_v14 = vld [vmem:[%s1098_s3] sm:$0xff] }
  0x26   :  { %787 = vmatmul.msk.bf16.gmra.mxu1 %vm166_vm1, %v859_v54  ;;  %v501_v54 = vsel %vm478_vm4, %v499_v47, %v500_v48  ;;  %v134_v27 = vrot.slane %v851_v22, 1  ;;  %v354_v28 = vrot.slane %v851_v22, 2  ;;  %v509_v29 = vrot.slane %v847_v20, 3 }
  0x27   :  { %v539_v58 = vpack.c.bf16 %v503_v55, %v501_v54  ;;  %v510_v30 = vrot.slane %v848_v21, 3  ;;  %v512_v31 = vrot.slane %v851_v22, 3  ;;  %v856_v44 = vunpack.c.h.bf16 %v867_v41 }
  0x28   :  { %v136_v45 = vrot.slane %v852_v42, 1  ;;  %v137_v46 = vrot.slane %v855_v43, 1  ;;  %v356_v48 = vrot.slane %v852_v42, 2  ;;  %v357_v49 = vrot.slane %v855_v43, 2 }
  0x29   :  { %v513_v37 = vsel %vm478_vm4, %v510_v30, %v512_v31  ;;  %v139_v47 = vrot.slane %v856_v44, 1  ;;  %v359_v50 = vrot.slane %v856_v44, 2  ;;  %v74_v51 = vpack.c.bf16 %v855_v43, %v852_v42 }
  0x2a   :  { %v514_v52 = vrot.slane %v852_v42, 3  ;;  %v515_v53 = vrot.slane %v855_v43, 3  ;;  %v517_v54 = vrot.slane %v856_v44, 3  ;;  %v138_v55 = vsel %vm100_vm2, %v136_v45, %v137_v46 }
  0x2b   :  { %vm742_vm6 = vcmask 1042434   ;;  %vm745_vm7 = vcmask 1043459   ;;  %vm748_vm8 = vcmask 1044484   ;;  %vm751_vm9 = vcmask 1045509  }
  0x2c   :  { %v516_v59 = vsel %vm478_vm4, %v514_v52, %v515_v53  ;;  %v518_v60 = vsel %vm478_vm4, %v515_v53, %v517_v54  ;;  %vm754_vm10 = vcmask 1046534   ;;  %vm757_vm11 = vcmask 1047559  }
  0x2d   :  { %779 = vmatmul.msk.bf16.gmra.mxu0 %vm166_vm1, %v159_v10  ;;  %795 = vmatmul.msk.bf16.gmra.mxu2 %vm166_vm1, %v379_v11  ;;  %v130_v10 = vsel %vm100_vm2, %v127_v0, %v129_v1  ;;  %v348_v11 = vsel %vm320_vm3, %v346_v2, %v347_v3  ;;  %v542_v63 = vpack.c.bf16 %v518_v60, %v516_v59 }
  0x2e   :  { %803 = vmatmul.msk.bf16.gmra.mxu3 %vm166_vm1, %v537_v12  ;;  %v350_v12 = vsel %vm320_vm3, %v347_v3, %v349_v4  ;;  %v162_v15 = vpack.c.bf16 %v130_v10, %v128_v9 }
  0x2f   :  { %v382_v16 = vpack.c.bf16 %v350_v12, %v348_v11 }
  0x36   :  { %788 = vmatmul.msk.bf16.gmra.mxu1 %vm166_vm1, %v70_v23  ;;  %v131_v23 = vrot.slane %v847_v20, 1 }
  0x38   :  { %v133_v32 = vsel %vm100_vm2, %v131_v23, %v132_v24 }
  0x3d   :  { %780 = vmatmul.msk.bf16.gmra.mxu0 %vm166_vm1, %v160_v33  ;;  %796 = vmatmul.msk.bf16.gmra.mxu2 %vm166_vm1, %v380_v34  ;;  %v135_v33 = vsel %vm100_vm2, %v132_v24, %v134_v27  ;;  %v353_v34 = vsel %vm320_vm3, %v351_v25, %v352_v26 }
  0x3e   :  { %804 = vmatmul.msk.bf16.gmra.mxu3 %vm166_vm1, %v538_v35  ;;  %v355_v35 = vsel %vm320_vm3, %v352_v26, %v354_v28  ;;  %v163_v38 = vpack.c.bf16 %v135_v33, %v133_v32 }
  0x3f   :  { %v383_v39 = vpack.c.bf16 %v355_v35, %v353_v34 }
  0x46   :  { %789 = vmatmul.msk.bf16.gmra.mxu1 %vm166_vm1, %v862_v36  ;;  %v511_v36 = vsel %vm478_vm4, %v509_v29, %v510_v30 }
  0x47   :  { %v541_v40 = vpack.c.bf16 %v513_v37, %v511_v36 }
  0x4d   :  { %781 = vmatmul.msk.bf16.gmra.mxu0 %vm166_vm1, %v161_v56  ;;  %797 = vmatmul.msk.bf16.gmra.mxu2 %vm166_vm1, %v381_v57  ;;  %v140_v56 = vsel %vm100_vm2, %v137_v46, %v139_v47  ;;  %v358_v57 = vsel %vm320_vm3, %v356_v48, %v357_v49 }
  0x4e   :  { %805 = vmatmul.msk.bf16.gmra.mxu3 %vm166_vm1, %v539_v58  ;;  %v360_v58 = vsel %vm320_vm3, %v357_v49, %v359_v50  ;;  %v164_v61 = vpack.c.bf16 %v140_v56, %v138_v55 }
  0x4f   :  { %v384_v62 = vpack.c.bf16 %v360_v58, %v358_v57  ;;  %v1067_v58 = vld [vmem:[%s1097_s2] ss:$0 sm:$0xff]  ;;  %s896_s2 = smov [#allocation2]  }
  0x50   :  { %s766_s24 = sshll.u32 %s896_s2, 4  ;;  %s767_s24 = int_to_ptr.vmem [resolvable:$true] %s766_s24 }
  0x56   :  { %790 = vmatmul.msk.bf16.gmra.mxu1 %vm166_vm1, %v72_v5 }
  0x5d   :  { %782 = vmatmul.msk.bf16.gmra.mxu0 %vm166_vm1, %v162_v15  ;;  %798 = vmatmul.msk.bf16.gmra.mxu2 %vm166_vm1, %v382_v16  ;;  %v1058_v15 = vld [vmem:[%s1098_s3 + $0x8] sm:$0xff] }
  0x5e   :  { %806 = vmatmul.msk.bf16.gmra.mxu3 %vm166_vm1, %v540_v17 }
  0x66   :  { %791 = vmatmul.msk.bf16.gmra.mxu1 %vm166_vm1, %v865_v18 }
  0x6d   :  { %783 = vmatmul.msk.bf16.gmra.mxu0 %vm166_vm1, %v163_v38  ;;  %799 = vmatmul.msk.bf16.gmra.mxu2 %vm166_vm1, %v383_v39 }
  0x6e   :  { %807 = vmatmul.msk.bf16.gmra.mxu3 %vm166_vm1, %v541_v40 }
  0x76   :  { %792 = vmatmul.msk.bf16.gmra.mxu1 %vm166_vm1, %v74_v51 }
  0x7d   :  { %784 = vmatmul.msk.bf16.gmra.mxu0 %vm166_vm1, %v164_v61  ;;  %800 = vmatmul.msk.bf16.gmra.mxu2 %vm166_vm1, %v384_v62 }
  0x7e   :  { %808 = vmatmul.msk.bf16.gmra.mxu3 %vm166_vm1, %v542_v63 }
  0x83   :  { %v280_v0 = vpop.f32.mrf.mxu1 }
  0x8a   :  { %v204_v1 = vpop.f32.mrf.mxu0 }
  0x8b   :  { %v281_v2 = vadd.f32 %v280_v0, %v204_v1  ;;  %v282_v3 = vpop.f32.mrf.mxu1 }
  0x90   :  { %v422_v4 = vpop.f32.mrf.mxu2 }
  0x91   :  { %v462_v5 = vadd.f32 %v422_v4, %v281_v2  ;;  %v580_v6 = vpop.f32.mrf.mxu3 }
  0x92   :  { %v206_v7 = vpop.f32.mrf.mxu0 }
  0x93   :  { %v620_v8 = vadd.f32 %v580_v6, %v462_v5  ;;  %v283_v9 = vadd.f32 %v282_v3, %v206_v7  ;;  %v285_v10 = vpop.f32.mrf.mxu1 }
  0x95   :  { %v638_v20 = vadd.f32 %v1053_v14, %v620_v8 }
  0x98   :  { %v424_v11 = vpop.f32.mrf.mxu2 }
  0x99   :  { %v463_v12 = vadd.f32 %v424_v11, %v283_v9  ;;  %v582_v13 = vpop.f32.mrf.mxu3 }
  0x9a   :  { %v209_v16 = vpop.f32.mrf.mxu0 }
  0x9b   :  { %v621_v17 = vadd.f32 %v582_v13, %v463_v12  ;;  %v286_v18 = vadd.f32 %v285_v10, %v209_v16  ;;  %v287_v19 = vpop.f32.mrf.mxu1 }
  0x9d   :  { %v639_v21 = vadd.f32 %v1058_v15, %v621_v17 }
  0x9f   :  { %v654_v22 = vmax.f32 %v638_v20, %v639_v21 }
  0xa0   :  { %v427_v23 = vpop.f32.mrf.mxu2 }
  0xa1   :  { %v464_v24 = vadd.f32 %v427_v23, %v286_v18  ;;  %v585_v25 = vpop.f32.mrf.mxu3  ;;  %v655_v30 = vrot.slane %v654_v22, 4 }
  0xa2   :  { %v211_v26 = vpop.f32.mrf.mxu0 }
  0xa3   :  { %v622_v27 = vadd.f32 %v585_v25, %v464_v24  ;;  %v288_v28 = vadd.f32 %v287_v19, %v211_v26  ;;  %v290_v29 = vpop.f32.mrf.mxu1  ;;  %v656_v32 = vmax.f32 %v654_v22, %v655_v30 }
  0xa5   :  { %v657_v39 = vrot.slane %v656_v32, 2  ;;  %v640_v40 = vadd.f32 %v1053_v14, %v622_v27 }
  0xa7   :  { %v658_v44 = vmax.f32 %v656_v32, %v657_v39 }
  0xa8   :  { %v429_v31 = vpop.f32.mrf.mxu2 }
  0xa9   :  { %v465_v33 = vadd.f32 %v429_v31, %v288_v28  ;;  %v587_v34 = vpop.f32.mrf.mxu3  ;;  %v659_v53 = vrot.slane %v658_v44, 1 }
  0xaa   :  { %v214_v35 = vpop.f32.mrf.mxu0 }
  0xab   :  { %v623_v36 = vadd.f32 %v587_v34, %v465_v33  ;;  %v291_v37 = vadd.f32 %v290_v29, %v214_v35  ;;  %v292_v38 = vpop.f32.mrf.mxu1  ;;  %v660_v57 = vmax.f32 %v658_v44, %v659_v53 }
  0xad   :  { %v641_v41 = vadd.f32 %v1058_v15, %v623_v36  ;;  %v714_v3 = vadd.f32 %v1067_v58, %v660_v57 }
  0xaf   :  { %v661_v42 = vmax.f32 %v640_v40, %v641_v41  ;;  %v722_v10 = vmax.f32 %v714_v3, 0.0 }
  0xb0   :  { %v432_v43 = vpop.f32.mrf.mxu2 }
  0xb1   :  { %v662_v45 = vrot.slane %v661_v42, 4  ;;  %v466_v46 = vadd.f32 %v432_v43, %v291_v37  ;;  %v590_v47 = vpop.f32.mrf.mxu3 }
  0xb2   :  { %v216_v48 = vpop.f32.mrf.mxu0 }
  0xb3   :  { %v663_v49 = vmax.f32 %v661_v42, %v662_v45  ;;  %v624_v50 = vadd.f32 %v590_v47, %v466_v46  ;;  %v293_v51 = vadd.f32 %v292_v38, %v216_v48  ;;  %v295_v52 = vpop.f32.mrf.mxu1 }
  0xb5   :  { %v664_v54 = vrot.slane %v663_v49, 2  ;;  %v642_v5 = vadd.f32 %v1053_v14, %v624_v50 }
  0xb7   :  { %v665_v55 = vmax.f32 %v663_v49, %v664_v54 }
  0xb8   :  { %v434_v56 = vpop.f32.mrf.mxu2 }
  0xb9   :  { %v666_v59 = vrot.slane %v665_v55, 1  ;;  %v467_v60 = vadd.f32 %v434_v56, %v293_v51  ;;  %v592_v61 = vpop.f32.mrf.mxu3 }
  0xba   :  { %v219_v62 = vpop.f32.mrf.mxu0 }
  0xbb   :  { %v667_v63 = vmax.f32 %v665_v55, %v666_v59  ;;  %v625_v0 = vadd.f32 %v592_v61, %v467_v60  ;;  %v296_v1 = vadd.f32 %v295_v52, %v219_v62  ;;  %v297_v2 = vpop.f32.mrf.mxu1 }
  0xbd   :  { %v715_v4 = vadd.f32 %v1067_v58, %v667_v63  ;;  %v643_v6 = vadd.f32 %v1058_v15, %v625_v0 }
  0xbf   :  { %v723_v7 = vmax.f32 %v715_v4, 0.0  ;;  %v668_v8 = vmax.f32 %v642_v5, %v643_v6 }
  0xc0   :  { %v437_v9 = vpop.f32.mrf.mxu2 }
  0xc1   :  { %v738_v11 = vrot.slane %v723_v7, 7  ;;  %v669_v12 = vrot.slane %v668_v8, 4  ;;  %v468_v13 = vadd.f32 %v437_v9, %v296_v1  ;;  %v595_v16 = vpop.f32.mrf.mxu3 }
  0xc2   :  { %v221_v17 = vpop.f32.mrf.mxu0 }
  0xc3   :  { %v670_v18 = vmax.f32 %v668_v8, %v669_v12  ;;  %v626_v19 = vadd.f32 %v595_v16, %v468_v13  ;;  %v740_v20 = vsel %vm739_vm5, %v738_v11, %v722_v10  ;;  %v300_v21 = vpop.f32.mrf.mxu1  ;;  %v298_v24 = vadd.f32 %v297_v2, %v221_v17 }
  0xc5   :  { %v671_v22 = vrot.slane %v670_v18, 2  ;;  %v644_v34 = vadd.f32 %v1053_v14, %v626_v19 }
  0xc7   :  { %v672_v23 = vmax.f32 %v670_v18, %v671_v22 }
  0xc8   :  { %v439_v25 = vpop.f32.mrf.mxu2 }
  0xc9   :  { %v673_v26 = vrot.slane %v672_v23, 1  ;;  %v469_v27 = vadd.f32 %v439_v25, %v298_v24  ;;  %v597_v28 = vpop.f32.mrf.mxu3 }
  0xca   :  { %v224_v29 = vpop.f32.mrf.mxu0 }
  0xcb   :  { %v674_v30 = vmax.f32 %v672_v23, %v673_v26  ;;  %v627_v31 = vadd.f32 %v597_v28, %v469_v27  ;;  %v302_v32 = vpop.f32.mrf.mxu1  ;;  %v301_v1 = vadd.f32 %v300_v21, %v224_v29 }
  0xcd   :  { %v716_v33 = vadd.f32 %v1067_v58, %v674_v30  ;;  %v645_v35 = vadd.f32 %v1058_v15, %v627_v31 }
  0xcf   :  { %v724_v36 = vmax.f32 %v716_v33, 0.0  ;;  %v675_v37 = vmax.f32 %v644_v34, %v645_v35 }
  0xd0   :  { %v442_v38 = vpop.f32.mrf.mxu2 }
  0xd1   :  { %v741_v39 = vrot.slane %v724_v36, 6  ;;  %v676_v40 = vrot.slane %v675_v37, 4  ;;  %v600_v41 = vpop.f32.mrf.mxu3  ;;  %v470_v8 = vadd.f32 %v442_v38, %v301_v1 }
  0xd2   :  { %v226_v42 = vpop.f32.mrf.mxu0 }
  0xd3   :  { %v677_v43 = vmax.f32 %v675_v37, %v676_v40  ;;  %v743_v44 = vsel %vm742_vm6, %v741_v39, %v740_v20  ;;  %v305_v45 = vpop.f32.mrf.mxu1  ;;  %v303_v2 = vadd.f32 %v302_v32, %v226_v42  ;;  %v628_v17 = vadd.f32 %v600_v41, %v470_v8 }
  0xd5   :  { %v678_v46 = vrot.slane %v677_v43, 2  ;;  %v646_v24 = vadd.f32 %v1053_v14, %v628_v17 }
  0xd7   :  { %v679_v47 = vmax.f32 %v677_v43, %v678_v46 }
  0xd8   :  { %v444_v48 = vpop.f32.mrf.mxu2 }
  0xd9   :  { %v680_v49 = vrot.slane %v679_v47, 1  ;;  %v602_v50 = vpop.f32.mrf.mxu3  ;;  %v471_v6 = vadd.f32 %v444_v48, %v303_v2 }
  0xda   :  { %v229_v51 = vpop.f32.mrf.mxu0 }
  0xdb   :  { %v681_v52 = vmax.f32 %v679_v47, %v680_v49  ;;  %v307_v54 = vpop.f32.mrf.mxu1  ;;  %v306_v4 = vadd.f32 %v305_v45, %v229_v51  ;;  %v629_v10 = vadd.f32 %v602_v50, %v471_v6 }
  0xdd   :  { %v717_v53 = vadd.f32 %v1067_v58, %v681_v52  ;;  %v647_v22 = vadd.f32 %v1058_v15, %v629_v10 }
  0xdf   :  { %v725_v55 = vmax.f32 %v717_v53, 0.0  ;;  %v682_v27 = vmax.f32 %v646_v24, %v647_v22 }
  0xe0   :  { %v447_v56 = vpop.f32.mrf.mxu2 }
  0xe1   :  { %v744_v57 = vrot.slane %v725_v55, 5  ;;  %v605_v59 = vpop.f32.mrf.mxu3  ;;  %v472_v9 = vadd.f32 %v447_v56, %v306_v4  ;;  %v683_v35 = vrot.slane %v682_v27, 4 }
  0xe2   :  { %v231_v60 = vpop.f32.mrf.mxu0 }
  0xe3   :  { %v1077_v61 = vsel %vm745_vm7, %v744_v57, %v743_v44  ;;  %v310_v62 = vpop.f32.mrf.mxu1  ;;  %v308_v5 = vadd.f32 %v307_v54, %v231_v60  ;;  %v630_v20 = vadd.f32 %v605_v59, %v472_v9  ;;  %v684_v41 = vmax.f32 %v682_v27, %v683_v35 }
  0xe5   :  { %v648_v25 = vadd.f32 %v1053_v14, %v630_v20  ;;  %v685_v48 = vrot.slane %v684_v41, 2 }
  0xe7   :  { %v686_v55 = vmax.f32 %v684_v41, %v685_v48 }
  0xe8   :  { %v449_v63 = vpop.f32.mrf.mxu2 }
  0xe9   :  { %v607_v0 = vpop.f32.mrf.mxu3  ;;  %v473_v7 = vadd.f32 %v449_v63, %v308_v5  ;;  %v687_v1 = vrot.slane %v686_v55, 1 }
  0xea   :  { %v234_v3 = vpop.f32.mrf.mxu0 }
  0xeb   :  { %v631_v12 = vadd.f32 %v607_v0, %v473_v7  ;;  %v311_v13 = vadd.f32 %v310_v62, %v234_v3  ;;  %v312_v18 = vpop.f32.mrf.mxu1  ;;  %v688_v7 = vmax.f32 %v686_v55, %v687_v1 }
  0xed   :  { %v649_v21 = vadd.f32 %v1058_v15, %v631_v12  ;;  %v718_v12 = vadd.f32 %v1067_v58, %v688_v7 }
  0xef   :  { %v689_v29 = vmax.f32 %v648_v25, %v649_v21 }
  0xf0   :  { %v452_v11 = vpop.f32.mrf.mxu2 }
  0xf1   :  { %v610_v16 = vpop.f32.mrf.mxu3  ;;  %v474_v23 = vadd.f32 %v452_v11, %v311_v13  ;;  %v690_v37 = vrot.slane %v689_v29, 4 }
  0xf2   :  { %v236_v19 = vpop.f32.mrf.mxu0 }
  0xf3   :  { %v313_v26 = vadd.f32 %v312_v18, %v236_v19  ;;  %v632_v30 = vadd.f32 %v610_v16, %v474_v23  ;;  %v315_v36 = vpop.f32.mrf.mxu1  ;;  %v691_v43 = vmax.f32 %v689_v29, %v690_v37  ;;  %v726_v19 = vmax.f32 %v718_v12, 0.0 }
  0xf5   :  { %v650_v38 = vadd.f32 %v1053_v14, %v632_v30  ;;  %v692_v50 = vrot.slane %v691_v43, 2  ;;  %v747_v21 = vrot.slane %v726_v19, 4 }
  0xf7   :  { %v693_v57 = vmax.f32 %v691_v43, %v692_v50  ;;  %v749_v27 = vsel %vm748_vm8, %v747_v21, %v1077_v61 }
  0xf8   :  { %v454_v28 = vpop.f32.mrf.mxu2 }
  0xf9   :  { %v475_v31 = vadd.f32 %v454_v28, %v313_v26  ;;  %v612_v32 = vpop.f32.mrf.mxu3  ;;  %v694_v2 = vrot.slane %v693_v57, 1 }
  0xfa   :  { %v239_v33 = vpop.f32.mrf.mxu0 }
  0xfb   :  { %v633_v34 = vadd.f32 %v612_v32, %v475_v31  ;;  %v316_v45 = vadd.f32 %v315_v36, %v239_v33  ;;  %v317_v53 = vpop.f32.mrf.mxu1  ;;  %v695_v8 = vmax.f32 %v693_v57, %v694_v2 }
  0xfd   :  { %v651_v39 = vadd.f32 %v1058_v15, %v633_v34  ;;  %v719_v13 = vadd.f32 %v1067_v58, %v695_v8 }
  0xff   :  { %v696_v40 = vmax.f32 %v650_v38, %v651_v39  ;;  %v727_v20 = vmax.f32 %v719_v13, 0.0 }
 0x100   :  { %v457_v42 = vpop.f32.mrf.mxu2 }
 0x101   :  { %v697_v44 = vrot.slane %v696_v40, 4  ;;  %v615_v46 = vpop.f32.mrf.mxu3  ;;  %v476_v51 = vadd.f32 %v457_v42, %v316_v45  ;;  %v750_v24 = vrot.slane %v727_v20, 3 }
 0x102   :  { %v241_v49 = vpop.f32.mrf.mxu0 }
 0x103   :  { %v698_v47 = vmax.f32 %v696_v40, %v697_v44  ;;  %v318_v54 = vadd.f32 %v317_v53, %v241_v49  ;;  %v634_v59 = vadd.f32 %v615_v46, %v476_v51  ;;  %v752_v28 = vsel %vm751_vm9, %v750_v24, %v749_v27 }
 0x105   :  { %v699_v52 = vrot.slane %v698_v47, 2  ;;  %v652_v3 = vadd.f32 %v1053_v14, %v634_v59 }
 0x107   :  { %v700_v62 = vmax.f32 %v698_v47, %v699_v52 }
 0x108   :  { %v459_v56 = vpop.f32.mrf.mxu2 }
 0x109   :  { %v477_v60 = vadd.f32 %v459_v56, %v318_v54  ;;  %v617_v63 = vpop.f32.mrf.mxu3  ;;  %v701_v5 = vrot.slane %v700_v62, 1 }
 0x10b   :  { %v635_v0 = vadd.f32 %v617_v63, %v477_v60  ;;  %v702_v10 = vmax.f32 %v700_v62, %v701_v5 }
 0x10d   :  { %v653_v4 = vadd.f32 %v1058_v15, %v635_v0  ;;  %v720_v17 = vadd.f32 %v1067_v58, %v702_v10 }
 0x10f   :  { %v703_v6 = vmax.f32 %v652_v3, %v653_v4  ;;  %v728_v22 = vmax.f32 %v720_v17, 0.0 }
 0x111   :  { %v704_v9 = vrot.slane %v703_v6, 4  ;;  %v753_v25 = vrot.slane %v728_v22, 2 }
 0x113   :  { %v705_v11 = vmax.f32 %v703_v6, %v704_v9  ;;  %v755_v30 = vsel %vm754_vm10, %v753_v25, %v752_v28 }
 0x115   :  { %v706_v16 = vrot.slane %v705_v11, 2 }
 0x117   :  { %v707_v18 = vmax.f32 %v705_v11, %v706_v16 }
 0x119   :  { %v708_v14 = vrot.slane %v707_v18, 1 }
 0x11b   :  { %v709_v15 = vmax.f32 %v707_v18, %v708_v14 }
 0x11d   :  { %v721_v23 = vadd.f32 %v1067_v58, %v709_v15 }
 0x11f   :  { %v729_v26 = vmax.f32 %v721_v23, 0.0 }
 0x121   :  { %v756_v29 = vrot.slane %v729_v26, 1 }
 0x123   :  { %v758_v58 = vsel %vm757_vm11, %v756_v29, %v755_v30 }
 0x124   :  { %760 = vst [vmem:[#allocation2] sm:$0xff] %v758_v58 }
 0x125   :  { %771 = dma.vmem_to_hbm [thread:$0]  %s767_s24, 128, %s769_s1, [#allocation3]  }
 0x126   :  { %894 = dma.done.wait [#allocation3], 128  }
 0x127   :  { %895 = vsyncadd [#allocation3], 4294967168 }
 0x128   :  { %776 = vsyncpa [#allocation3], 1 }

</bundles_post_ra>
